<compile_context>
chip_gen: v6e
topology: v6e:2x2x1
jax: 0.10.0
libtpu: 0.0.40
codegen_flags: <defaults>
</compile_context>

<pallas_src>
import jax
import jax.numpy as jnp
from jax import lax
from jax.experimental import pallas as pl
from jax.experimental.pallas import tpu as pltpu


# --------------------------------------------------------------------------- #
# Kernel bodies
# --------------------------------------------------------------------------- #
def _gelu_new(x):
    # GPT-2 "new" GELU: 0.5 * x * (1 + tanh(sqrt(2/pi) * (x + 0.044715 x^3)))
    c = jnp.sqrt(2.0 / jnp.pi).astype(x.dtype)
    return 0.5 * x * (1.0 + jnp.tanh(c * (x + 0.044715 * (x * x * x))))


def _partial_out(x_ref, w_in_ref, b_in_ref, w_out_ref):
    # matmul1 (bf16 operands, f32 MXU accumulation) + bias + f32 GELU,
    # then this d_mlp tile's partial contribution to matmul2.
    h = jnp.dot(x_ref[...], w_in_ref[...], preferred_element_type=jnp.float32)
    h = _gelu_new(h + b_in_ref[...])                       # (tm, tf) f32, VPU/EUP
    return jnp.dot(h.astype(w_out_ref.dtype), w_out_ref[...],
                   preferred_element_type=jnp.float32)     # (tm, d_model) f32


def _mlp_kernel_f32out(x_ref, w_in_ref, b_in_ref, w_out_ref, b_out_ref, o_ref):
    # f32 output: accumulate directly into the VMEM-resident output block
    # (its block index is constant across the f axis), no extra scratch.
    f = pl.program_id(1)

    @pl.when(f == 0)
    def _init():
        o_ref[...] = jnp.broadcast_to(b_out_ref[...], o_ref.shape)

    o_ref[...] += _partial_out(x_ref, w_in_ref, b_in_ref, w_out_ref)


def _mlp_kernel_acc(x_ref, w_in_ref, b_in_ref, w_out_ref, b_out_ref, o_ref,
                    acc_ref):
    # Non-f32 output: accumulate in an f32 VMEM scratch, cast on the last step.
    f = pl.program_id(1)

    @pl.when(f == 0)
    def _init():
        acc_ref[...] = jnp.broadcast_to(b_out_ref[...], acc_ref.shape)

    acc_ref[...] += _partial_out(x_ref, w_in_ref, b_in_ref, w_out_ref)

    @pl.when(f == pl.num_programs(1) - 1)
    def _finalize():
        o_ref[...] = acc_ref[...].astype(o_ref.dtype)


# --------------------------------------------------------------------------- #
# Tile selection (generation-aware via VMEM budget)
# --------------------------------------------------------------------------- #
def _round_up(x: int, m: int) -> int:
    return -(-x // m) * m


def _vmem_budget_bytes() -> int:
    phys = None
    try:
        phys = getattr(pltpu.get_tpu_info(), "vmem_capacity_bytes", None)
    except Exception:
        phys = None
    if not phys:
        phys = 64 << 20  # conservative fallback = v7x per-TensorCore VMEM
    # Leave headroom for Mosaic internal scratch / semaphores.
    return int(phys) * 3 // 4


def _step_vmem_bytes(tm: int, tf: int, d_model: int, out_bytes: int) -> int:
    db = 2  # double-buffered pipeline stages
    x_blk = db * tm * d_model * 2          # bf16 activations
    wi_blk = db * d_model * tf * 2         # bf16 W_in block
    wo_blk = db * tf * d_model * 2         # bf16 W_out block
    bi_blk = db * tf * 4                   # f32 b_in block
    bo_blk = db * d_model * 4              # f32 b_out block
    o_blk = db * tm * d_model * out_bytes  # output block
    acc = tm * d_model * 4                 # f32 accumulator (worst case)
    hidden = tm * tf * (4 + 2)             # f32 hidden + bf16 copy for dot2
    return x_blk + wi_blk + wo_blk + bi_blk + bo_blk + o_blk + acc + hidden


def _choose_tiles(M: int, d_model: int, d_mlp: int, out_bytes: int,
                  budget: int) -> tuple[int, int]:
    # tf: largest divisor of d_mlp that is a multiple of 128 and <= 1024
    #     (fills the 256-wide v6e/v7x MXU and keeps the f-step count low).
    tf = d_mlp
    start = (min(d_mlp, 1024) // 128) * 128
    for cand in range(start, 0, -128):
        if d_mlp % cand == 0:
            tf = cand
            break

    # tm: large to amortize per-row-tile weight re-streaming, but keep >= 2
    # parallel grid steps when M allows (v7x has 2 TensorCores).
    m8 = _round_up(max(M, 1), 8)
    tm = min(1024, m8)
    if m8 >= 16 and -(-m8 // tm) < 2:
        tm = _round_up(m8 // 2, 8)
    tm = max(8, _round_up(tm, 8))

    # Shrink until the double-buffered working set fits the VMEM budget.
    while _step_vmem_bytes(tm, tf, d_model, out_bytes) > budget and tm > 8:
        tm = max(8, (tm // 2 // 8) * 8)
    while (_step_vmem_bytes(tm, tf, d_model, out_bytes) > budget
           and tf > 128 and tf % 256 == 0 and d_mlp % (tf // 2) == 0):
        tf //= 2
    return tm, tf


# --------------------------------------------------------------------------- #
# Wrapper
# --------------------------------------------------------------------------- #
def mlp(x: jax.Array, w_in: jax.Array, b_in: jax.Array,
        w_out: jax.Array, b_out: jax.Array,
        *, tm: int | None = None, tf: int | None = None,
        compute_dtype=jnp.bfloat16) -> jax.Array:
    """x: [batch, posn, d_model]; W_in: [d_model, d_mlp]; b_in: [d_mlp];
       W_out: [d_mlp, d_model]; b_out: [d_model] -> [batch, posn, d_model]."""
    batch, posn, d_model = x.shape
    d_model_w, d_mlp = w_in.shape
    assert d_model == d_model_w
    assert w_out.shape == (d_mlp, d_model)

    out_dtype = x.dtype
    out_bytes = jnp.dtype(out_dtype).itemsize
    M = batch * posn

    budget = _vmem_budget_bytes()
    tm_auto, tf_auto = _choose_tiles(M, d_model, d_mlp, out_bytes, budget)
    if tm is None:
        tm = tm_auto
    if tf is None:
        tf = tf_auto
    assert tm % 8 == 0, "row tile must be a multiple of 8"
    assert d_mlp % tf == 0 and (tf % 128 == 0 or tf == d_mlp), \
        "d_mlp tile must divide d_mlp and be 128-aligned (or the full axis)"

    # Pad the row axis so any batch*posn works; padded rows are sliced off.
    M_pad = _round_up(M, tm)

    # Feed the MXU bf16 (activations + weights); biases stay f32.
    x2 = x.reshape(M, d_model).astype(compute_dtype)
    if M_pad != M:
        x2 = jnp.pad(x2, ((0, M_pad - M), (0, 0)))
    w_in_c = w_in.astype(compute_dtype)
    w_out_c = w_out.astype(compute_dtype)
    b_in2 = b_in.reshape(1, d_mlp).astype(jnp.float32)
    b_out2 = b_out.reshape(1, d_model).astype(jnp.float32)

    f32_out = out_dtype == jnp.float32
    kernel = _mlp_kernel_f32out if f32_out else _mlp_kernel_acc
    scratch = [] if f32_out else [pltpu.VMEM((tm, d_model), jnp.float32)]

    out = pl.pallas_call(
        kernel,
        out_shape=jax.ShapeDtypeStruct((M_pad, d_model), out_dtype),
        grid_spec=pltpu.PrefetchScalarGridSpec(
            num_scalar_prefetch=0,
            grid=(M_pad // tm, d_mlp // tf),
            in_specs=[
                pl.BlockSpec((tm, d_model), lambda i, f: (i, 0)),   # x rows
                pl.BlockSpec((d_model, tf), lambda i, f: (0, f)),   # W_in cols
                pl.BlockSpec((1, tf),       lambda i, f: (0, f)),   # b_in
                pl.BlockSpec((tf, d_model), lambda i, f: (f, 0)),   # W_out rows
                pl.BlockSpec((1, d_model),  lambda i, f: (0, 0)),   # b_out
            ],
            out_specs=pl.BlockSpec((tm, d_model), lambda i, f: (i, 0)),
            scratch_shapes=scratch,
        ),
        compiler_params=pltpu.CompilerParams(
            dimension_semantics=("parallel", "arbitrary"),
            vmem_limit_bytes=int(budget),
        ),
    )(x2, w_in_c, b_in2, w_out_c, b_out2)

    if M_pad != M:
        out = out[:M]
    return out.reshape(batch, posn, d_model)


def mlp_ref(x, w_in, b_in, w_out, b_out):
    h = jnp.einsum("bpd,df->bpf", x.astype(jnp.float32), w_in,
                   precision=lax.Precision.HIGHEST) + b_in
    h = _gelu_new(h)
    return jnp.einsum("bpf,fd->bpd", h, w_out,
                      precision=lax.Precision.HIGHEST) + b_out


if __name__ == "__main__":
    # Small, TPU-tile-friendly config (scaled-down GPT-2: d_mlp = 4 * d_model).
    batch, seq = 2, 8
    d_model, d_mlp = 128, 512
    init_range = 0.02

    key = jax.random.PRNGKey(0)
    k_x, k_wi, k_bi, k_wo, k_bo = jax.random.split(key, 5)
    x = jax.random.normal(k_x, (batch, seq, d_model), dtype=jnp.float32)
    W_in = (init_range * jax.random.normal(k_wi, (d_model, d_mlp))).astype(jnp.float32)
    W_out = (init_range * jax.random.normal(k_wo, (d_mlp, d_model))).astype(jnp.float32)
    # Module inits biases to zero; use random values here so the check covers them.
    b_in = (0.1 * jax.random.normal(k_bi, (d_mlp,))).astype(jnp.float32)
    b_out = (0.1 * jax.random.normal(k_bo, (d_model,))).astype(jnp.float32)

    ref = mlp_ref(x, W_in, b_in, W_out, b_out)

    # f32-output path (accumulates directly in the output block).
    # tf=256 -> two reduction steps, exercising the accumulation path.
    out = mlp(x, W_in, b_in, W_out, b_out, tf=256)
    jax.block_until_ready(out)
    assert out.shape == (batch, seq, d_model)
    assert out.dtype == jnp.float32
    # bf16 MXU operands vs f32 reference -> slightly looser tolerances.
    assert jnp.allclose(out, ref, atol=1e-2, rtol=1e-2), "mismatch (f32 out)"

    # bf16-output path (f32 VMEM accumulator scratch + final cast).
    out_bf = mlp(x.astype(jnp.bfloat16), W_in, b_in, W_out, b_out, tf=256)
    jax.block_until_ready(out_bf)
    assert out_bf.dtype == jnp.bfloat16
    assert jnp.allclose(out_bf.astype(jnp.float32), ref, atol=3e-2, rtol=3e-2), \
        "mismatch (bf16 out)"

    print("KERNEL_OK")
</pallas_src>

<mosaic_0001>
module attributes {stable_mosaic.version = 11 : i64} {
  func.func @_mlp_kernel_f32out(%arg0: i32, %arg1: i32, %arg2: memref<8x128xbf16, #tpu.memory_space<vmem>>, %arg3: memref<128x256xbf16, #tpu.memory_space<vmem>>, %arg4: memref<1x256xf32, #tpu.memory_space<vmem>>, %arg5: memref<256x128xbf16, #tpu.memory_space<vmem>>, %arg6: memref<1x128xf32, #tpu.memory_space<vmem>>, %arg7: memref<8x128xf32, #tpu.memory_space<vmem>>) attributes {dimension_semantics = [#tpu.dimension_semantics<parallel>, #tpu.dimension_semantics<arbitrary>], iteration_bounds = array<i64: 2, 2>, scalar_prefetch = 0 : i64, scratch_operands = 0 : i64, tpu.core_type = #tpu.core_type<tc>, window_params = [{transform_indices = @transform_0, window_bounds = array<i64: 8, 128>}, {transform_indices = @transform_1, window_bounds = array<i64: 128, 256>}, {transform_indices = @transform_2, window_bounds = array<i64: 1, 256>}, {transform_indices = @transform_3, window_bounds = array<i64: 256, 128>}, {pipeline_mode = #tpu.pipeline_mode<synchronous>, transform_indices = @transform_4, window_bounds = array<i64: 1, 128>}, {transform_indices = @transform_5, window_bounds = array<i64: 8, 128>}]} {
    %c0_i32 = arith.constant 0 : i32
    %0 = arith.cmpi eq, %arg1, %c0_i32 : i32
    %1 = arith.extui %0 : i1 to i32
    %c0_i32_0 = arith.constant 0 : i32
    %2 = arith.cmpi ne, %1, %c0_i32_0 : i32
    scf.if %2 {
      %c0_17 = arith.constant 0 : index
      %c0_18 = arith.constant 0 : index
      %29 = vector.load %arg6[%c0_17, %c0_18] : memref<1x128xf32, #tpu.memory_space<vmem>>, vector<1x128xf32>
      %30 = vector.shape_cast %29 : vector<1x128xf32> to vector<1x128xf32>
      %31 = vector.broadcast %30 : vector<1x128xf32> to vector<8x128xf32>
      %c0_19 = arith.constant 0 : index
      %c0_20 = arith.constant 0 : index
      %32 = vector.load %arg7[%c0_19, %c0_20] : memref<8x128xf32, #tpu.memory_space<vmem>>, vector<8x128xf32>
      tpu.vector_store %arg7[%c0_19, %c0_20], %31 {strides = array<i32>} : memref<8x128xf32, #tpu.memory_space<vmem>>, vector<8x128xf32>,
    } else {
    }
    %c0 = arith.constant 0 : index
    %c0_1 = arith.constant 0 : index
    %3 = vector.load %arg7[%c0, %c0_1] : memref<8x128xf32, #tpu.memory_space<vmem>>, vector<8x128xf32>
    %c0_2 = arith.constant 0 : index
    %c0_3 = arith.constant 0 : index
    %4 = vector.load %arg2[%c0_2, %c0_3] : memref<8x128xbf16, #tpu.memory_space<vmem>>, vector<8x128xbf16>
    %c0_4 = arith.constant 0 : index
    %c0_5 = arith.constant 0 : index
    %5 = vector.load %arg3[%c0_4, %c0_5] : memref<128x256xbf16, #tpu.memory_space<vmem>>, vector<128x256xbf16>
    %cst = arith.constant dense<0.000000e+00> : vector<8x256xf32>
    %6 = tpu.matmul %4, %5, %cst {dimension_numbers = #tpu.dot_dimension_numbers<[1], [0], [0], [1], [0, 0, 1, 1], [], []>} : vector<8x128xbf16>, vector<128x256xbf16>, vector<8x256xf32> -> vector<8x256xf32>
    %c0_6 = arith.constant 0 : index
    %c0_7 = arith.constant 0 : index
    %7 = vector.load %arg4[%c0_6, %c0_7] : memref<1x256xf32, #tpu.memory_space<vmem>>, vector<1x256xf32>
    %8 = vector.broadcast %7 : vector<1x256xf32> to vector<8x256xf32>
    %9 = arith.addf %6, %8 : vector<8x256xf32>
    %cst_8 = arith.constant 0.636619746 : f32
    %10 = math.sqrt %cst_8 : f32
    %cst_9 = arith.constant 5.000000e-01 : f32
    %11 = vector.broadcast %cst_9 : f32 to vector<8x256xf32>
    %12 = arith.mulf %11, %9 : vector<8x256xf32>
    %13 = arith.mulf %9, %9 : vector<8x256xf32>
    %14 = arith.mulf %13, %9 : vector<8x256xf32>
    %cst_10 = arith.constant 4.471500e-02 : f32
    %15 = vector.broadcast %cst_10 : f32 to vector<8x256xf32>
    %16 = arith.mulf %15, %14 : vector<8x256xf32>
    %17 = arith.addf %9, %16 : vector<8x256xf32>
    %18 = vector.broadcast %10 : f32 to vector<8x256xf32>
    %19 = arith.mulf %18, %17 : vector<8x256xf32>
    %20 = math.tanh %19 : vector<8x256xf32>
    %cst_11 = arith.constant 1.000000e+00 : f32
    %21 = vector.broadcast %cst_11 : f32 to vector<8x256xf32>
    %22 = arith.addf %21, %20 : vector<8x256xf32>
    %23 = arith.mulf %12, %22 : vector<8x256xf32>
    %24 = arith.truncf %23 : vector<8x256xf32> to vector<8x256xbf16>
    %c0_12 = arith.constant 0 : index
    %c0_13 = arith.constant 0 : index
    %25 = vector.load %arg5[%c0_12, %c0_13] : memref<256x128xbf16, #tpu.memory_space<vmem>>, vector<256x128xbf16>
    %cst_14 = arith.constant dense<0.000000e+00> : vector<8x128xf32>
    %26 = tpu.matmul %24, %25, %cst_14 {dimension_numbers = #tpu.dot_dimension_numbers<[1], [0], [0], [1], [0, 0, 1, 1], [], []>} : vector<8x256xbf16>, vector<256x128xbf16>, vector<8x128xf32> -> vector<8x128xf32>
    %27 = arith.addf %3, %26 : vector<8x128xf32>
    %c0_15 = arith.constant 0 : index
    %c0_16 = arith.constant 0 : index
    %28 = vector.load %arg7[%c0_15, %c0_16] : memref<8x128xf32, #tpu.memory_space<vmem>>, vector<8x128xf32>
    tpu.vector_store %arg7[%c0_15, %c0_16], %27 {strides = array<i32>} : memref<8x128xf32, #tpu.memory_space<vmem>>, vector<8x128xf32>,
    return
  }
  func.func @transform_0(%arg0: i32, %arg1: i32) -> (i32, i32) {
    %c0_i32 = arith.constant 0 : i32
    %c0_i32_0 = arith.constant 0 : i32
    return %arg0, %c0_i32 : i32, i32
  }
  func.func @transform_1(%arg0: i32, %arg1: i32) -> (i32, i32) {
    %c0_i32 = arith.constant 0 : i32
    %c0_i32_0 = arith.constant 0 : i32
    return %c0_i32, %arg1 : i32, i32
  }
  func.func @transform_2(%arg0: i32, %arg1: i32) -> (i32, i32) {
    %c0_i32 = arith.constant 0 : i32
    %c0_i32_0 = arith.constant 0 : i32
    return %c0_i32, %arg1 : i32, i32
  }
  func.func @transform_3(%arg0: i32, %arg1: i32) -> (i32, i32) {
    %c0_i32 = arith.constant 0 : i32
    %c0_i32_0 = arith.constant 0 : i32
    return %arg1, %c0_i32 : i32, i32
  }
  func.func @transform_4(%arg0: i32, %arg1: i32) -> (i32, i32) {
    %c0_i32 = arith.constant 0 : i32
    %c0_i32_0 = arith.constant 0 : i32
    %c0_i32_1 = arith.constant 0 : i32
    return %c0_i32, %c0_i32_0 : i32, i32
  }
  func.func @transform_5(%arg0: i32, %arg1: i32) -> (i32, i32) {
    %c0_i32 = arith.constant 0 : i32
    %c0_i32_0 = arith.constant 0 : i32
    return %arg0, %c0_i32 : i32, i32
  }
}

</mosaic_0001>

<bundles_post_ra>
// kernel: tpu_custom_call.1
= control target key start
LH: loop header
LB: loop body
LE: loop exit
PB: predicated region body
PF: predicated region fallthrough
CT: control target
= control target key end

     0   :  { %s1754_s0 = inlined_call_operand.hbm [shape: bf16[16,128], index: 0, kind: input, shape index: {}]   ;;  %s1755_s1 = inlined_call_operand.hbm [shape: bf16[128,512], index: 1, kind: input, shape index: {}]   ;;  %s1756_s2 = inlined_call_operand.hbm [shape: f32[1,512], index: 2, kind: input, shape index: {}]   ;;  %s1757_s3 = inlined_call_operand.hbm [shape: bf16[512,128], index: 3, kind: input, shape index: {}]   ;;  %s1758_s4 = inlined_call_operand.vmem [shape: f32[1,128], index: 4, kind: input, shape index: {}]   ;;  %s1759_s5 = inlined_call_operand.hbm [shape: f32[16,128], index: 5, kind: output, shape index: {}]  }
   0x1   :  { %1769 = sst [smem:[#allocation24_spill]] %s1754_s0 }
   0x2   :  { %1770 = sst [smem:[#allocation25_spill]] %s1755_s1 }
   0x3   :  { %1771 = sst [smem:[#allocation26_spill]] %s1758_s4 }
   0x4   :  { %1772 = sst [smem:[#allocation27_spill]] %s1759_s5 }
   0x5   :  { %10 = vsyncpa [#allocation3], 0 }
   0x6   :  { %12 = vsyncpa [#allocation3 + $0x1], 0 }
   0x7   :  { %13 = vsyncpa [#allocation6], 0 }
   0x8   :  { %15 = vsyncpa [#allocation6 + $0x1], 0 }
   0x9   :  { %16 = vsyncpa [#allocation9], 0 }
   0xa   :  { %18 = vsyncpa [#allocation9 + $0x1], 0 }
   0xb   :  { %19 = vsyncpa [#allocation4], 0 }
   0xc   :  { %21 = vsyncpa [#allocation4 + $0x1], 0  ;;  %s1419_s18 = smov 0   ;;  %s1421_s19 = smov 0  }
   0xd   :  { %s1423_s20 = smov 0   ;;  %s1425_s21 = smov 0  }
   0xe   :  { %s1427_s22 = smov 0   ;;  %s1429_s23 = smov 0  }
   0xf   :  { %s1431_s24 = smov 0   ;;  %s1433_s25 = smov 0  }
  0x10   :  { %s1435_s26 = smov 0   ;;  %s1437_s27 = smov 0  }
  0x11   :  { %s1439_s28 = smov 0  }
  0x12 LB: > { %1773 = sst [smem:[#allocation15_spill]] %s1344_s20  ;;  %p54_p0 = scmp.eq.s32.totalorder %s1376_s28, 0  ;;  %s1376_s28 = sphi %s1439_s28, %s27_s28   ;;  %s1372_s27 = sphi %s1437_s27, %s1808_s27   ;;  %s1368_s26 = sphi %s1435_s26, %s1814_s26   ;;  %s1364_s25 = sphi %s1433_s25, %s1806_s25   ;;  %s1360_s24 = sphi %s1431_s24, %s1813_s24   ;;  %s1356_s23 = sphi %s1429_s23, %s1805_s23   ;;  %s1352_s22 = sphi %s1427_s22, %s1812_s22   ;;  %s1348_s21 = sphi %s1425_s21, %s1811_s21   ;;  %s1344_s20 = sphi %s1423_s20, %s1803_s20   ;;  %s1340_s19 = sphi %s1421_s19, %s1810_s19   ;;  %s1336_s18 = sphi %s1419_s18, %s1809_s18  }
  0x13   : > { %1774 = sst [smem:[#allocation16_spill]] %s1356_s23  ;;  %p79_p1 = scmp.ne.s32.totalorder %s1344_s20, %s1340_s19 }
  0x14   : > { %1775 = sst [smem:[#allocation17_spill]] %s1360_s24  ;;  %p1764_p2 = scmp.lt.s32.totalorder %s1376_s28, 4 }
  0x15   : > { %1776 = sst [smem:[#allocation18_spill]] %s1364_s25  ;;  %s229_s30 = sand.u32 1, %s1376_s28  }
  0x16   : > { %1777 = sst [smem:[#allocation19_spill]] %s1372_s27  ;;  %p81_p3 = por %p79_p1, %p54_p0 }
  0x17   : > { %s1483_s6 = sand.u32 1, %s1344_s20   ;;  %s944_s7 = sshll.u32 %s1368_s26, 7 }
  0x18   : > { %s1760_s8 = sshll.u32 %s1483_s6, 7  ;;  %s1778_s1 = sld [smem:[#allocation25_spill]] }
  0x19   : > { %p1492_p4 = pnand %p1764_p2, %p81_p3  ;;  %s233_s13 = scalar_lea.vmem [#allocation5], %s1760_s8 }
  0x1a   : > { %s240_s14 = sshll.u32 %s233_s13, 4  ;;  %s1498_s15 = scalar_lea.sflag [#allocation6], %s229_s30  ;;  %s241_s14 = int_to_ptr.vmem [resolvable:$true] %s240_s14 }
  0x1b   : > { %p1761_p5 = pneg %p1492_p4  ;;  %s1149_s16 = scalar_lea.vmem %s241_s14, 2048 }
  0x1c   : > { %p1150_p6 = scmp.ne.s32.totalorder %s241_s14, %s1149_s16  ;;  %s1378_s17 = smov [#allocation5]  }
  0x1e   : > { %s239_s11 = scalar_lea.hbm %s1778_s1, %s944_s7  ;;  %p1152_p7 = pnand %p1150_p6, %p1761_p5 }
  0x1f   : > { %s1154_s7 = sshll.u32 %s1378_s17, 4  ;;  %s1155_s7 = int_to_ptr.vmem [resolvable:$false] %s1154_s7 }
  0x20   : > { %p1153_p8 = pneg %p1152_p7  ;;  %s1156_s9 = scalar_lea.vmem %s1155_s7, 4096 }
  0x21   : > { %p1157_p9 = scmp.lt.s32.totalorder %s241_s14, %s1155_s7  ;;  %p1158_p10 = scmp.lt.s32.totalorder %s1156_s9, %s1149_s16 }
  0x23   : > { %p1159_p11 = por %p1158_p10, %p1157_p9 }
  0x25   : > { %p1160_p12 = pnand %p1159_p11, %p1153_p8 }
  0x27   : > { %1163 = shalt.err (!%p1160_p12)
}
  0x28   : > { %s1379_s10 = smov 256   ;;  %s1380_s30 = smov 128  }
  0x29   : > { %s1381_s13 = smov 8   ;;  %p900_p13 = scmp.ge.s32.totalorder %s1376_s28, 1 }
  0x2a   : > { %985 = dma.hbm_to_vmem [thread:$0]  (!%p1492_p4), %s239_s11, 2048, %s241_s14, %s1498_s15, %s1379_s10, %s1380_s30, %s1381_s13  }
  0x2b   : > { %p288_p1 = scmp.lt.s32.totalorder %s1376_s28, 5  ;;  %s1515_s17 = sadd.s32 4294967295, %s1376_s28  }
  0x2c   : > { %s886_s7 = sadd.s32 4294967294, %s1376_s28   ;;  %s36_s9 = sadd.s32 1, %s1368_s26 }
  0x2d   : > { %p1510_p3 = pnand %p900_p13, %p288_p1  ;;  %p37_p6 = scmp.ge.s32.totalorder %s36_s9, 2 }
  0x2e   : > { %s39_s8 = sadd.s32 1, %s1372_s27  ;;  %s46_s11 = sadd.s32 1, %s1356_s23 }
  0x2f   : > { %p53_p7 = scmp.ne.s32.totalorder %s1356_s23, %s1352_s22  ;;  %s1816_s9 = smov (%p37_p6, %s36_s9), 0 }
  0x30   : > { %1781 = sst [smem:[#allocation20_spill]] %s1816_s9  ;;  %s1818_s8 = smov (!%p37_p6, %s39_s8), %s1372_s27 }
  0x31   : > { %p1531_p8 = por %p54_p0, %p53_p7  ;;  %p59_p9 = scmp.ne.s32.totalorder %s1352_s22, %s1348_s21 }
  0x32   : > { %p41_p10 = scmp.ge.s32.totalorder %s1818_s8, 2  ;;  %p60_p11 = scmp.eq.s32.totalorder %s1515_s17, 0 }
  0x33   : > { %s69_s10 = ssub.s32 %s1368_s26, %s1816_s9  ;;  %p85_p12 = scmp.ne.s32.totalorder %s1340_s19, %s1336_s18 }
  0x34   : > { %s1820_s8 = smov (%p41_p10, %s1818_s8), 0  ;;  %p1547_p13 = por %p60_p11, %p59_p9 }
  0x35   : > { %1783 = sst [smem:[#allocation21_spill]] %s1820_s8  ;;  %p70_p0 = scmp.eq.s32.totalorder %s69_s10, 0 }
  0x36   : > { %s43_s13 = ssub.s32 %s1372_s27, %s1820_s8  ;;  %p1553_p1 = por %p85_p12, %p60_p11 }
  0x37   : > { %p44_p6 = scmp.eq.s32.totalorder %s43_s13, 0  ;;  %p182_p5 = scmp.eq.s32.totalorder %s1515_s17, 3 }
  0x38   : > { %s1786_s18 = sadd.s32 1, %s1344_s20  ;;  %p188_p2 = scmp.eq.s32.totalorder %s886_s7, 3 }
  0x39   : > { %s1561_s1 = scalar_select %p70_p0, %s1344_s20, %s1786_s18  }
  0x3a   : > { %s1564_s9 = scalar_select %p44_p6, %s1356_s23, %s46_s11  }
  0x3b   : > { %1787 = sst [smem:[#allocation22_spill]] %s1561_s1  ;;  %p1569_p10 = por %p182_p5, %p53_p7 }
  0x3c   : > { %1788 = sst [smem:[#allocation23_spill]] %s1564_s9  ;;  %s211_s10 = sand.u32 1, %s1356_s23  }
  0x3d   : > { %s890_s8 = sshll.u32 %s1372_s27, 6  ;;  %p1578_p11 = por %p188_p2, %p59_p9 }
  0x3e   : > { %s889_s13 = sshll.u32 %s211_s10, 2  ;;  %s1791_s0 = sld [smem:[#allocation24_spill]] }
  0x3f   : > { %s1790_s25 = scalar_select %p1578_p11, 1, 0 }
  0x40   : > { %p1792_p12 = scmp.lt.s32.totalorder %s1376_s28, 4  ;;  %s215_s7 = scalar_lea.vmem [#allocation2], %s889_s13 }
  0x41   : > { %s222_s9 = sshll.u32 %s215_s7, 4  ;;  %s894_s27 = sshll.u32 %s1483_s6, 1  ;;  %s223_s9 = int_to_ptr.vmem [resolvable:$true] %s222_s9 }
  0x42   : > { %p1589_p0 = pnand %p1792_p12, %p1531_p8  ;;  %s212_s23 = scalar_lea.sflag [#allocation3], %s211_s10 }
  0x43   : > { %s1177_s1 = scalar_lea.vmem %s223_s9, 64  ;;  %s1382_s4 = smov [#allocation2]  }
  0x44   : > { %s220_s18 = scalar_lea.hbm %s1791_s0, %s890_s8  ;;  %p1166_p2 = pneg %p1589_p0 }
  0x45   : > { %p1178_p5 = scmp.ne.s32.totalorder %s223_s9, %s1177_s1  ;;  %s1182_s24 = sshll.u32 %s1382_s4, 4  ;;  %s1183_s24 = int_to_ptr.vmem [resolvable:$false] %s1182_s24 }
  0x46   : > { %s1184_s8 = scalar_lea.vmem %s1183_s24, 128  ;;  %p1185_p8 = scmp.lt.s32.totalorder %s223_s9, %s1183_s24 }
  0x47   : > { %p1180_p7 = pnand %p1178_p5, %p1166_p2  ;;  %p1186_p6 = scmp.lt.s32.totalorder %s1184_s8, %s1177_s1 }
  0x49   : > { %p1181_p9 = pneg %p1180_p7  ;;  %p1187_p12 = por %p1186_p6, %p1185_p8 }
  0x4b   : > { %p1188_p11 = pnand %p1187_p12, %p1181_p9 }
  0x4d   : > { %1191 = shalt.err (!%p1188_p11)
}
  0x4e   : > { %982 = dma.hbm_to_vmem [thread:$0]  (!%p1589_p0), %s220_s18, 64, %s223_s9, %s212_s23  }
  0x4f   : > { %s945_s14 = sshll.u32 %s1368_s26, 5  ;;  %s254_s0 = scalar_lea.vmem [#allocation7], %s894_s27 }
  0x50   : > { %s260_s7 = scalar_lea.hbm %s1756_s2, %s945_s14  ;;  %s262_s20 = sshll.u32 %s254_s0, 4  ;;  %s263_s20 = int_to_ptr.vmem [resolvable:$true] %s262_s20 }
  0x51   : > { %s1205_s4 = scalar_lea.vmem %s263_s20, 32  ;;  %p1794_p5 = pneg %p1492_p4 }
  0x52   : > { %p1206_p2 = scmp.ne.s32.totalorder %s263_s20, %s1205_s4  ;;  %s1383_s1 = smov [#allocation7]  }
  0x53   : > { %s1210_s24 = sshll.u32 %s1383_s1, 4  ;;  %s1211_s24 = int_to_ptr.vmem [resolvable:$false] %s1210_s24 }
  0x54   : > { %p1208_p7 = pnand %p1206_p2, %p1794_p5  ;;  %s1212_s11 = scalar_lea.vmem %s1211_s24, 64 }
  0x55   : > { %p1213_p11 = scmp.lt.s32.totalorder %s263_s20, %s1211_s24  ;;  %p1214_p0 = scmp.lt.s32.totalorder %s1212_s11, %s1205_s4 }
  0x56   : > { %p1209_p9 = pneg %p1208_p7 }
  0x57   : > { %p1215_p8 = por %p1214_p0, %p1213_p11 }
  0x59   : > { %p1216_p6 = pnand %p1215_p8, %p1209_p9 }
  0x5b   : > { %1219 = shalt.err (!%p1216_p6)
}
  0x5c   : > { %988 = dma.hbm_to_vmem [thread:$0]  (!%p1492_p4), %s260_s7, 32, %s263_s20, %s1498_s15  }
  0x5d   : > { %s946_s0 = sshll.u32 %s1368_s26, 11  ;;  %s1795_s18 = sshll.u32 %s1483_s6, 7 }
  0x5e   : > { %s279_s9 = scalar_lea.hbm %s1757_s3, %s946_s0  ;;  %s273_s8 = scalar_lea.vmem [#allocation8], %s1795_s18 }
  0x5f   : > { %s280_s14 = sshll.u32 %s273_s8, 4  ;;  %s270_s10 = scalar_lea.sflag [#allocation9], %s1483_s6  ;;  %s281_s14 = int_to_ptr.vmem [resolvable:$true] %s280_s14 }
  0x60   : > { %s1233_s13 = scalar_lea.vmem %s281_s14, 2048  ;;  %p1796_p2 = pmov %p1794_p5 }
  0x61   : > { %p1234_p12 = scmp.ne.s32.totalorder %s281_s14, %s1233_s13  ;;  %s1384_s4 = smov [#allocation8]  }
  0x62   : > { %s1238_s1 = sshll.u32 %s1384_s4, 4  ;;  %s1239_s1 = int_to_ptr.vmem [resolvable:$false] %s1238_s1 }
  0x63   : > { %p1236_p5 = pnand %p1234_p12, %p1796_p2  ;;  %s1240_s20 = scalar_lea.vmem %s1239_s1, 4096 }
  0x64   : > { %p1241_p9 = scmp.lt.s32.totalorder %s281_s14, %s1239_s1  ;;  %p1242_p11 = scmp.lt.s32.totalorder %s1240_s20, %s1233_s13 }
  0x65   : > { %p1237_p7 = pneg %p1236_p5 }
  0x66   : > { %p1243_p0 = por %p1242_p11, %p1241_p9 }
  0x68   : > { %p1244_p8 = pnand %p1243_p0, %p1237_p7 }
  0x6a   : > { %1247 = shalt.err (!%p1244_p8)
}
  0x6b   : > { %s1385_s15 = smov 64   ;;  %s1386_s7 = smov 4  }
  0x6c   : > { %991 = dma.hbm_to_vmem [thread:$0]  (!%p1492_p4), %s279_s9, 2048, %s281_s14, %s270_s10, %s1385_s15, %s1385_s15, %s1386_s7  }
  0x6d   : > { %292 = sbr.rel (%p1510_p3) target bundleno = 610 (0x262), region = 40  ;;  %s1623_s6 = sand.u32 (!%p1510_p3), 1, %s1352_s22  }
  0x6e   : > { %s901_s24 = sshll.u32 (!%p1510_p3), %s1623_s6, 2  ;;  %s295_s11 = scalar_lea.sflag (!%p1510_p3), [#allocation3], %s1623_s6 }
  0x6f   : > { %s1627_s0 = scalar_lea.vmem (!%p1510_p3), [#allocation2], %s901_s24 }
  0x72   : > { %1319 = dma.done.wait (%p1547_p13), %s295_s11, 64  }
  0x73   : > { %1321 = vsyncadd (%p1547_p13), %s295_s11, 4294967232  ;;  %s303_s12 = sand.u32 1, %s1515_s17   ;;  %s305_s16 = sand.u32 1, %s1340_s19  }
  0x74   : > { %s902_s23 = sshll.u32 %s305_s16, 7  ;;  %s304_s27 = scalar_lea.sflag [#allocation6], %s303_s12 }
  0x75   : > { %s1635_s9 = scalar_lea.vmem [#allocation5], %s902_s23 }
  0x76   : > { %1323 = dma.done.wait (%p1553_p1), %s304_s27, 2080  }
  0x77   : > { %1325 = vsyncadd (%p1553_p1), %s304_s27, 4294965216  ;;  %s903_s18 = sshll.u32 %s305_s16, 1  ;;  %s322_s30 = scalar_lea.sflag [#allocation9], %s305_s16 }
  0x78   : > { %s1641_s8 = scalar_lea.vmem [#allocation7], %s903_s18  ;;  %s1643_s14 = scalar_lea.vmem [#allocation8], %s902_s23 }
  0x79   : > { %1327 = dma.done.wait (%p1553_p1), %s322_s30, 2048  }
  0x7a   : > { %1329 = vsyncadd (%p1553_p1), %s322_s30, 4294965248  ;;  %s905_s17 = sshll.u32 %s1623_s6, 3  ;;  %s1797_s13 = sld [smem:[#allocation17_spill]] }
  0x7b   : > { %s1650_s10 = scalar_lea.vmem [#allocation10], %s905_s17 }
  0x80   : > { %p906_p4 = scmp.ne.s32.totalorder %s1797_s13, 0 }
  0x81   : > { %s1798_s20 = sld [smem:[#allocation26_spill]] (!%p906_p4) }
  0x82   : > { %374 = sbr.rel (%p906_p4) target bundleno = 137 (0x89), region = 60 }
  0x87   : > { %v907_v0 = vld [vmem:[%s1798_s20] ss:$0 sm:$0xff] }
  0x88   : > { %382 = vst [vmem:[%s1650_s10] sm:$0xff] %v907_v0 }
  0x89 PF: > { %v1092_v1 = vld [vmem:[%s1635_s9 + $0x74] ss:$8 sps:$4 sm:$0xff]   ;;  %v1094_v2 = vld [vmem:[%s1635_s9 + $0x70] ss:$8 sps:$4 sm:$0xff]   ;;  %v1387_v3 = vmov 0   ;;  %v1122_v25 = vld [vmem:[%s1643_s14 + $0x60] sm:$0xff]   ;;  %v403_v35 = vlaneseq }
  0x8a   : > { %525 = vmatprep.mubr.bf16.mxu0 %v1387_v3  ;;  %493 = vmatprep.subr.bf16.mxu0 %v1092_v1  ;;  %v1095_v4 = vld [vmem:[%s1635_s9 + $0x64] ss:$8 sps:$4 sm:$0xff]   ;;  %v1097_v5 = vld [vmem:[%s1635_s9 + $0x60] ss:$8 sps:$4 sm:$0xff]   ;;  %v1098_v6 = vld [vmem:[%s1635_s9 + $0x54] ss:$8 sps:$4 sm:$0xff]  }
  0x8b   : > { %494 = vmatpush1.bf16.msra.mxu0 %v1094_v2  ;;  %v1100_v7 = vld [vmem:[%s1635_s9 + $0x50] ss:$8 sps:$4 sm:$0xff]   ;;  %v1101_v8 = vld [vmem:[%s1635_s9 + $0x44] ss:$8 sps:$4 sm:$0xff]   ;;  %v1103_v9 = vld [vmem:[%s1635_s9 + $0x40] ss:$8 sps:$4 sm:$0xff]  }
  0x8c   : > { %495 = vmatprep.subr.bf16.mxu0 %v1095_v4  ;;  %v1104_v10 = vld [vmem:[%s1635_s9 + $0x34] ss:$8 sps:$4 sm:$0xff]   ;;  %v1106_v11 = vld [vmem:[%s1635_s9 + $0x30] ss:$8 sps:$4 sm:$0xff]   ;;  %v1107_v12 = vld [vmem:[%s1635_s9 + $0x24] ss:$8 sps:$4 sm:$0xff]  }
  0x8d   : > { %v1109_v13 = vld [vmem:[%s1635_s9 + $0x20] ss:$8 sps:$4 sm:$0xff]   ;;  %v1110_v14 = vld [vmem:[%s1635_s9 + $0x14] ss:$8 sps:$4 sm:$0xff]   ;;  %v1112_v15 = vld [vmem:[%s1635_s9 + $0x10] ss:$8 sps:$4 sm:$0xff]  }
  0x8e   : > { %v1113_v16 = vld [vmem:[%s1635_s9 + $0x4] ss:$8 sps:$4 sm:$0xff]   ;;  %v1115_v17 = vld [vmem:[%s1635_s9] ss:$8 sps:$4 sm:$0xff]   ;;  %v384_v18 = vld [vmem:[%s1627_s0] sm:$0xf] }
  0x8f   : > { %496 = vmatpush1.bf16.msra.mxu0 %v1097_v5  ;;  %v1116_v19 = vld [vmem:[%s1643_s14 + $0x78] sm:$0xff]   ;;  %v1118_v21 = vld [vmem:[%s1643_s14 + $0x70] sm:$0xff]   ;;  %v1120_v23 = vld [vmem:[%s1643_s14 + $0x68] sm:$0xff]   ;;  %v404_v36 = vshrl.u32 %v403_v35, 7  ;;  %s1799_s29 = sld [smem:[#allocation18_spill]]  ;;  %s738_s7 = sshll.u32 %s1650_s10, 4  ;;  %s739_s7 = int_to_ptr.vmem [resolvable:$true] %s738_s7 }
  0x90   : > { %497 = vmatprep.subr.bf16.mxu0 %v1098_v6  ;;  %v1117_v20 = vld [vmem:[%s1643_s14 + $0x38] sm:$0xff]   ;;  %947 = vmatprep.subr.bf16.mxu1 %v1116_v19  ;;  %v1119_v22 = vld [vmem:[%s1643_s14 + $0x30] sm:$0xff]   ;;  %v1121_v24 = vld [vmem:[%s1643_s14 + $0x28] sm:$0xff]   ;;  %s1800_s0 = sld [smem:[#allocation27_spill]]  ;;  %s725_s16 = scalar_lea.sflag [#allocation4], %s1623_s6 }
  0x91   : > { %948 = vmatpush3.bf16.msra.mxu1 %v1117_v20  ;;  %v1123_v26 = vld [vmem:[%s1643_s14 + $0x20] sm:$0xff]   ;;  %v1124_v27 = vld [vmem:[%s1643_s14 + $0x58] sm:$0xff]   ;;  %v1126_v29 = vld [vmem:[%s1643_s14 + $0x50] sm:$0xff]   ;;  %v405_v37 = vsub.s32 0, %v404_v36  ;;  %v409_v39 = vsub.s32 1, %v404_v36  ;;  %s1248_s23 = scalar_lea.vmem %s739_s7, 128 }
  0x92   : > { %949 = vmatprep.subr.bf16.mxu1 %v1118_v21  ;;  %v1125_v28 = vld [vmem:[%s1643_s14 + $0x18] sm:$0xff]   ;;  %v1127_v30 = vld [vmem:[%s1643_s14 + $0x10] sm:$0xff]   ;;  %v1128_v31 = vld [vmem:[%s1643_s14 + $0x48] sm:$0xff]   ;;  %p1249_p3 = scmp.ne.s32.totalorder %s739_s7, %s1248_s23  ;;  %s1388_s27 = smov [#allocation10]  }
  0x93   : > { %498 = vmatpush1.bf16.msra.mxu0 %v1100_v7  ;;  %v1129_v32 = vld [vmem:[%s1643_s14 + $0x8] sm:$0xff]   ;;  %v1130_v33 = vld [vmem:[%s1643_s14 + $0x40] sm:$0xff]   ;;  %v401_v38 = vld [vmem:[%s1641_s8] sm:$0x3]  ;;  %s1252_s9 = sshll.u32 %s1388_s27, 4  ;;  %s1253_s9 = int_to_ptr.vmem [resolvable:$false] %s1252_s9 }
  0x94   : > { %499 = vmatprep.subr.bf16.mxu0 %v1101_v8  ;;  %v1131_v34 = vld [vmem:[%s1643_s14] sm:$0xff]   ;;  %v406_v40 = vrot.slane %v401_v38, %v405_v37  ;;  %v410_v41 = vrot.slane %v401_v38, %v409_v39  ;;  %p1250_p13 = pnand %p1249_p3, %p1569_p10  ;;  %s1254_s18 = scalar_lea.vmem %s1253_s9, 256 }
  0x95   : > { %950 = vmatpush3.bf16.msra.mxu1 %v1119_v22  ;;  %v383_v5 = vld [vmem:[%s1650_s10] sm:$0xff]  ;;  %s941_s15 = sshll.u32 %s1799_s29, 7  ;;  %p1255_p6 = scmp.lt.s32.totalorder %s739_s7, %s1253_s9 }
  0x96   : > { %951 = vmatprep.subr.bf16.mxu1 %v1120_v23  ;;  %s1697_s12 = scalar_lea.hbm %s1800_s0, %s941_s15  ;;  %p1251_p1 = pneg %p1250_p13 }
  0x97   : > { %500 = vmatpush1.bf16.msra.mxu0 %v1103_v9  ;;  %p1256_p12 = scmp.lt.s32.totalorder %s1254_s18, %s1248_s23 }
  0x98   : > { %501 = vmatprep.subr.bf16.mxu0 %v1104_v10 }
  0x99   : > { %952 = vmatpush3.bf16.msra.mxu1 %v1121_v24  ;;  %p1257_p2 = por %p1256_p12, %p1255_p6 }
  0x9a   : > { %953 = vmatprep.subr.bf16.mxu1 %v1122_v25 }
  0x9b   : > { %502 = vmatpush1.bf16.msra.mxu0 %v1106_v11  ;;  %p1258_p5 = pnand %p1257_p2, %p1251_p1 }
  0x9c   : > { %503 = vmatprep.subr.bf16.mxu0 %v1107_v12 }
  0x9d   : > { %954 = vmatpush3.bf16.msra.mxu1 %v1123_v26 }
  0x9e   : > { %955 = vmatprep.subr.bf16.mxu1 %v1124_v27 }
  0x9f   : > { %504 = vmatpush1.bf16.msra.mxu0 %v1109_v13 }
  0xa0   : > { %505 = vmatprep.subr.bf16.mxu0 %v1110_v14 }
  0xa1   : > { %956 = vmatpush3.bf16.msra.mxu1 %v1125_v28 }
  0xa2   : > { %957 = vmatprep.subr.bf16.mxu1 %v1126_v29 }
  0xa3   : > { %506 = vmatpush1.bf16.msra.mxu0 %v1112_v15 }
  0xa4   : > { %507 = vmatprep.subr.bf16.mxu0 %v1113_v16 }
  0xa5   : > { %958 = vmatpush3.bf16.msra.mxu1 %v1127_v30 }
  0xa6   : > { %959 = vmatprep.subr.bf16.mxu1 %v1128_v31 }
  0xa7   : > { %508 = vmatpush1.bf16.msra.mxu0 %v1115_v17 }
  0xa9   : > { %960 = vmatpush3.bf16.msra.mxu1 %v1129_v32 }
  0xaa   : > { %526 = vmatmul.mubr.bf16.vlgmr.msra.gmra.mxu0 %v384_v18  ;;  %961 = vmatprep.subr.bf16.mxu1 %v1130_v33 }
  0xad   : > { %962 = vmatpush3.bf16.msra.mxu1 %v1131_v34 }
 0x16a   : > { %v527_v42 = vpop.f32.mrf.mxu0 }
 0x16b   : > { %v528_v43 = vadd.f32 %v527_v42, %v406_v40 }
 0x16c   : > { %v529_v44 = vpop.f32.mrf.mxu0 }
 0x16d   : > { %v536_v45 = vmul.f32 %v528_v43, %v528_v43  ;;  %v530_v46 = vadd.f32 %v529_v44, %v410_v41  ;;  %v534_v61 = vmul.f32 0.5, %v528_v43 }
 0x16e   : > { %v531_v47 = vpop.f32.mrf.mxu0 }
 0x16f   : > { %v538_v48 = vmul.f32 %v536_v45, %v528_v43  ;;  %v537_v49 = vmul.f32 %v530_v46, %v530_v46  ;;  %v535_v62 = vmul.f32 0.5, %v530_v46 }
 0x170   : > { %v532_v50 = vpop.f32.mrf.mxu0 }
 0x171   : > { %v540_v51 = vmul.f32 0.044715, %v538_v48  ;;  %v539_v52 = vmul.f32 %v537_v49, %v530_v46 }
 0x173   : > { %v542_v53 = vadd.f32 %v540_v51, %v528_v43  ;;  %v541_v54 = vmul.f32 0.044715, %v539_v52 }
 0x175   : > { %v544_v55 = vmul.f32 0.7978845, %v542_v53  ;;  %v543_v56 = vadd.f32 %v541_v54, %v530_v46 }
 0x177   : > { %1132 = vtanh.f32 %v544_v55  ;;  %v545_v57 = vmul.f32 0.7978845, %v543_v56 }
 0x179   : > { %1134 = vtanh.f32 %v545_v57 }
 0x184   : > { %v1133_v58 = vpop.eup %1132 }
 0x185   : > { %v548_v59 = vadd.f32 1.0, %v1133_v58 }
 0x186   : > { %v1135_v60 = vpop.eup %1134 }
 0x187   : > { %v549_v63 = vadd.f32 1.0, %v1135_v60  ;;  %v550_v0 = vmul.f32 %v548_v59, %v534_v61 }
 0x189   : > { %v551_v1 = vmul.f32 %v549_v63, %v535_v62  ;;  %v552_v3 = vpack.c.bf16 %v550_v0, %v550_v0 }
 0x18b   : > { %v553_v2 = vpack.c.bf16 %v551_v1, %v551_v1 }
 0x18d   : > { %714 = vmatprep.mubr.bf16.mxu1 %v553_v2 }
 0x18e   : > { %715 = vmatmul.mubr.bf16.vlgmr.msra.gmra.mxu1 %v552_v3 }
 0x24e   : > { %v963_v4 = vpop.f32.mrf.mxu1 }
 0x250   : > { %v964_v6 = vpop.f32.mrf.mxu1 }
 0x251   : > { %v965_v7 = vadd.f32 %v964_v6, %v963_v4 }
 0x252   : > { %v966_v8 = vpop.f32.mrf.mxu1 }
 0x253   : > { %v722_v9 = vadd.f32 %v965_v7, %v383_v5 }
 0x254   : > { %v967_v10 = vpop.f32.mrf.mxu1 }
 0x255   : > { %723 = vst [vmem:[%s1650_s10] sm:$0xff] %v722_v9 }
 0x256   : > { %1261 = shalt.err (!%p1258_p5)
}
 0x257   : > { %s1262_s8 = scalar_lea.hbm %s1697_s12, 128  ;;  %s1266_s14 = scalar_lea.hbm %s1800_s0, 256 }
 0x258   : > { %p1263_p7 = scmp.ne.s32.totalorder %s1697_s12, %s1262_s8  ;;  %p1267_p0 = scmp.lt.s32.totalorder %s1697_s12, %s1800_s0 }
 0x259   : > { %p1268_p8 = scmp.lt.s32.totalorder %s1266_s14, %s1262_s8 }
 0x25a   : > { %p1264_p9 = pnand %p1263_p7, %p1569_p10 }
 0x25b   : > { %p1269_p4 = por %p1268_p8, %p1267_p0 }
 0x25c   : > { %p1265_p11 = pneg %p1264_p9 }
 0x25e   : > { %p1270_p3 = pnand %p1269_p4, %p1265_p11 }
 0x260   : > { %1273 = shalt.err (!%p1270_p3)
}
 0x261   : > { %977 = dma.vmem_to_hbm [thread:$0]  (%p1569_p10), %s739_s7, 128, %s1697_s12, %s725_s16  }
 0x262 PF: > { %p997_p13 = scmp.ge.s32.totalorder %s1376_s28, 2  ;;  %s750_s13 = sand.u32 1, %s1348_s21  }
 0x263   : > { %p1801_p1 = scmp.ne.s32.totalorder %s1790_s25, 0  ;;  %s751_s4 = scalar_lea.sflag [#allocation4], %s750_s13 }
 0x265   : > { %p993_p6 = pnand %p997_p13, %p1801_p1 }
 0x267   : > { %p994_p12 = pneg %p993_p6 }
 0x269   : > { %1331 = dma.done.wait (%p994_p12), %s751_s4, 128  }
 0x26a   : > { %1333 = vsyncadd (%p994_p12), %s751_s4, 4294967168  ;;  %s27_s28 = sadd.s32 1, %s1376_s28   ;;  %s1802_s1 = sld [smem:[#allocation15_spill]] }
 0x26b   : > { %p24_p2 = scmp.ge.s32.totalorder %s27_s28, 6   ;;  %s1803_s20 = sld [smem:[#allocation22_spill]] }
 0x26c   : > { %s1804_s5 = sld [smem:[#allocation16_spill]]  ;;  %s1809_s18 = smov %s1340_s19 }
 0x26d   : > { %s1805_s23 = sld [smem:[#allocation23_spill]]  ;;  %s1811_s21 = smov %s1352_s22 }
 0x26e   : > { %s1806_s25 = sld [smem:[#allocation19_spill]]  ;;  %s1813_s24 = smov %s1368_s26 }
 0x26f   : > { %s1807_s29 = sld [smem:[#allocation20_spill]] }
 0x270   : > { %s1808_s27 = sld [smem:[#allocation21_spill]]  ;;  %s1810_s19 = smov %s1802_s1 }
 0x271   :  { %26 = sbr.rel (!%p24_p2) target bundleno = 18 (0x12), region = 126 }
 0x272   : > { %s1812_s22 = smov %s1804_s5 }
 0x275   : > { %s1814_s26 = smov %s1807_s29 }
 0x276   :  { %756 = vsyncpa [#allocation3], 1 }
 0x277   :  { %758 = vsyncpa [#allocation3 + $0x1], 1 }
 0x278   :  { %759 = vsyncpa [#allocation6], 1 }
 0x279   :  { %761 = vsyncpa [#allocation6 + $0x1], 1 }
 0x27a   :  { %762 = vsyncpa [#allocation9], 1 }
 0x27b   :  { %764 = vsyncpa [#allocation9 + $0x1], 1 }
 0x27c   :  { %765 = vsyncpa [#allocation4], 1 }
 0x27d   :  { %767 = vsyncpa [#allocation4 + $0x1], 1 }

</bundles_post_ra>
